<compile_context>
chip_gen: v7x
topology: tpu7x:2x2x1
jax: 0.10.0
libtpu: 0.0.40
codegen_flags: <defaults>
</compile_context>

<pallas_src>
import functools

import jax
import jax.numpy as jnp
from jax.experimental import pallas as pl
from jax.experimental.pallas import tpu as pltpu

LANE = 128
SUBLANE = 8
MAX_TILE_ROWS = 4096          # (4096,128) f32 block = 2 MiB per input
SUB_ROWS = 512                # in-kernel sub-slice (temporaries ~256 KiB)
VMEM_LIMIT = 32 * 1024 * 1024 # safe on all gens (v7x physical = 64 MiB)


def _round_up(x, m):
    return ((x + m - 1) // m) * m


def _focal_elems(x, t, alpha, gamma, approx):
    """Elementwise sigmoid focal loss (matches torchvision.ops.sigmoid_focal_loss).

    EUP-lean: one exp(-|x|) reused for both the stable BCE term and sigmoid;
    integer gamma (default 2) uses repeated multiplies instead of pow; the
    p_t / alpha_t blends are algebraically reduced (still valid for soft
    targets)."""
    e = jnp.exp(-jnp.abs(x))                       # single EUP exp, reused
    ce = jnp.maximum(x, 0.0) - x * t + jnp.log1p(e)
    denom = 1.0 + e
    # approx=True pushes the divide onto the otherwise-idle EUP slot
    # (~1e-4 relative error); the 'none' path keeps the exact divide.
    inv = pl.reciprocal(denom, approx=True) if approx else 1.0 / denom
    p = jnp.where(x >= 0, inv, e * inv)            # == sigmoid(x)
    q = p + t - 2.0 * (p * t)                      # == 1 - p_t

    g = float(gamma)
    if g >= 0.0 and g == int(g):                   # fast path (default gamma=2)
        gi = int(g)
        if gi == 0:
            loss = ce
        else:
            mod = q
            for _ in range(gi - 1):
                mod = mod * q
            loss = ce * mod
    else:
        loss = ce * jnp.power(q, jnp.float32(g))

    if alpha >= 0:
        # alpha_t = alpha*t + (1-alpha)*(1-t); constants folded at trace time.
        loss = ((2.0 * alpha - 1.0) * t + (1.0 - alpha)) * loss
    return loss


def _focal_reduce_kernel(pred_ref, gt_ref, out_ref, *, alpha, gamma, rows,
                         tile_rows, sub_rows, n_inner, total_tiles,
                         full_tiles, n_grid_tiles):
    c = pl.program_id(0)          # parallel chunk (one per TensorCore on v7x)
    k = pl.program_id(1)          # sequential tile within the chunk
    tile_idx = c * n_inner + k
    n_sub = tile_rows // sub_rows
    groups = sub_rows // SUBLANE

    @pl.when(k == 0)
    def _():
        out_ref[...] = jnp.zeros_like(out_ref)

    def tile_partial(masked):
        # Sub-sliced elementwise chain; acc is a single (8,128) f32 vreg.
        acc = jnp.zeros((SUBLANE, LANE), jnp.float32)
        for s in range(n_sub):                      # static -> fully unrolled
            sl = pl.ds(s * sub_rows, sub_rows)
            x = pred_ref[sl, :].astype(jnp.float32)
            t = gt_ref[sl, :].astype(jnp.float32)
            l = _focal_elems(x, t, alpha, gamma, approx=True)
            if masked:
                r = jax.lax.broadcasted_iota(jnp.int32, (sub_rows, LANE), 0)
                grow = tile_idx * tile_rows + (s * sub_rows) + r
                l = jnp.where(grow < rows, l, 0.0)
            # (sub_rows,128) -> (groups,8,128); leading-axis sum is pure VALU.
            acc = acc + l.reshape(groups, SUBLANE, LANE).sum(axis=0)
        return acc

    if full_tiles == n_grid_tiles:
        # Every grid tile is fully valid: no masking anywhere.
        out_ref[...] += tile_partial(False)
    else:
        if full_tiles > 0:
            @pl.when(tile_idx < full_tiles)
            def _():
                out_ref[...] += tile_partial(False)
        if full_tiles < total_tiles:
            @pl.when(jnp.logical_and(tile_idx >= full_tiles,
                                     tile_idx < total_tiles))
            def _():
                out_ref[...] += tile_partial(True)
        # tile_idx >= total_tiles: duplicate tile from the fixed 2-way split.
        # Its input block index is clamped in the index_map (no OOB DMA, and
        # Pallas elides the repeated fetch); compute is skipped entirely.


def _focal_none_kernel(pred_ref, gt_ref, out_ref, *, alpha, gamma, sub_rows):
    n_sub = pred_ref.shape[0] // sub_rows
    for s in range(n_sub):                          # static -> fully unrolled
        sl = pl.ds(s * sub_rows, sub_rows)
        x = pred_ref[sl, :].astype(jnp.float32)
        t = gt_ref[sl, :].astype(jnp.float32)
        out_ref[sl, :] = _focal_elems(x, t, alpha, gamma, approx=False)


def _prep(pred, gt):
    """Flatten to a lane-dense (rows, 128) slab.

    Pure metadata reshape (no HBM copy) whenever numel % 128 == 0; only a
    sub-128 tail needs a pad (benign values: pred=-100, gt=0 -> padded loss is
    exactly 0).  Tiny inputs (< 512 rows) additionally pad rows to a multiple
    of 8 (cheap, array is tiny)."""
    n = pred.size
    flat_p = pred.reshape(-1)
    flat_g = gt.reshape(-1)
    rem = n % LANE
    if rem:
        # TODO(synk): sub-128 tails still cost one pad copy; a tiny XLA epilogue could avoid it.
        pad = LANE - rem
        flat_p = jnp.pad(flat_p, (0, pad), constant_values=-100.0)
        flat_g = jnp.pad(flat_g, (0, pad), constant_values=0)
    pred2d = flat_p.reshape(-1, LANE)
    gt2d = flat_g.reshape(-1, LANE)
    rows = pred2d.shape[0]
    if rows < SUB_ROWS and rows % SUBLANE:
        rpad = _round_up(rows, SUBLANE) - rows
        pred2d = jnp.pad(pred2d, ((0, rpad), (0, 0)), constant_values=-100.0)
        gt2d = jnp.pad(gt2d, ((0, rpad), (0, 0)), constant_values=0)
    return pred2d, gt2d, n


def _choose_tiles(rows):
    """Row-tile and sub-slice sizes (both multiples of 8, tile >= sub)."""
    if rows >= MAX_TILE_ROWS:
        return MAX_TILE_ROWS, SUB_ROWS
    if rows >= SUB_ROWS:
        return (rows // SUB_ROWS) * SUB_ROWS, SUB_ROWS
    return rows, rows   # rows % 8 == 0 guaranteed by _prep for this branch


def focal_loss(pred, gt, *, alpha=0.25, gamma=2.0, reduction='mean'):
    """JAX/Pallas equivalent of FocalLoss.forward(pred=..., gt=...)['loss']."""
    orig_shape = pred.shape
    pred2d, gt2d, n_valid = _prep(pred, gt)
    rows = pred2d.shape[0]
    tile_rows, sub_rows = _choose_tiles(rows)
    total_tiles = pl.cdiv(rows, tile_rows)

    if reduction == 'none':
        out = pl.pallas_call(
            functools.partial(_focal_none_kernel, alpha=alpha, gamma=gamma,
                              sub_rows=sub_rows),
            out_shape=jax.ShapeDtypeStruct((rows, LANE), jnp.float32),
            grid_spec=pltpu.PrefetchScalarGridSpec(
                num_scalar_prefetch=0, grid=(total_tiles,),
                in_specs=[pl.BlockSpec((tile_rows, LANE), lambda i: (i, 0)),
                          pl.BlockSpec((tile_rows, LANE), lambda i: (i, 0))],
                out_specs=pl.BlockSpec((tile_rows, LANE), lambda i: (i, 0))),
            compiler_params=pltpu.CompilerParams(
                dimension_semantics=("parallel",),
                vmem_limit_bytes=VMEM_LIMIT),
        )(pred2d, gt2d)
        flat = out.reshape(-1)
        if flat.shape[0] != n_valid:
            flat = flat[:n_valid]
        return flat.reshape(orig_shape)

    if reduction not in ('sum', 'mean'):
        # TODO(synk): 'dynamic' reduction needs host-side .item()/log10 divisor state; not a kernel op.
        raise ValueError(f'Invalid reduction: {reduction}')

    # Fixed 2-way chunk split so both v7x TensorCores always get work
    # (no-op cost on v5e/v6e: the possible extra grid step has a clamped
    # block index -> no re-fetch, and its compute is skipped in-kernel).
    n_outer = 2
    n_inner = pl.cdiv(total_tiles, n_outer)
    n_grid_tiles = n_outer * n_inner
    full_tiles = rows // tile_rows
    last_blk = total_tiles - 1
    if n_grid_tiles == total_tiles:
        in_idx = lambda c, k: (c * n_inner + k, 0)
    else:
        in_idx = lambda c, k: (jnp.minimum(c * n_inner + k, last_blk), 0)

    kernel = functools.partial(
        _focal_reduce_kernel, alpha=alpha, gamma=gamma, rows=rows,
        tile_rows=tile_rows, sub_rows=sub_rows, n_inner=n_inner,
        total_tiles=total_tiles, full_tiles=full_tiles,
        n_grid_tiles=n_grid_tiles)

    partials = pl.pallas_call(
        kernel,
        out_shape=jax.ShapeDtypeStruct((n_outer * SUBLANE, LANE), jnp.float32),
        grid_spec=pltpu.PrefetchScalarGridSpec(
            num_scalar_prefetch=0, grid=(n_outer, n_inner),
            in_specs=[pl.BlockSpec((tile_rows, LANE), in_idx),
                      pl.BlockSpec((tile_rows, LANE), in_idx)],
            out_specs=pl.BlockSpec((SUBLANE, LANE), lambda c, k: (c, 0))),
        compiler_params=pltpu.CompilerParams(
            dimension_semantics=("parallel", "arbitrary"),
            vmem_limit_bytes=VMEM_LIMIT),
    )(pred2d, gt2d)

    total = jnp.sum(partials)   # single tiny cross-lane reduce, outside kernel
    if reduction == 'mean':
        return total / jnp.float32(n_valid)
    return total


def focal_loss_ref(pred, gt, *, alpha=0.25, gamma=2.0, reduction='mean'):
    x = pred.astype(jnp.float32)
    t = gt.astype(jnp.float32)
    p = jax.nn.sigmoid(x)
    ce = jnp.maximum(x, 0.0) - x * t + jnp.log1p(jnp.exp(-jnp.abs(x)))
    p_t = p * t + (1.0 - p) * (1.0 - t)
    loss = ce * (1.0 - p_t) ** gamma
    if alpha >= 0:
        loss = (alpha * t + (1.0 - alpha) * (1.0 - t)) * loss
    if reduction == 'mean':
        return jnp.mean(loss)
    if reduction == 'sum':
        return jnp.sum(loss)
    return loss


if __name__ == "__main__":
    key = jax.random.PRNGKey(0)
    k1, k2 = jax.random.split(key)
    # NCHW logits and binary targets (e.g. dense prediction head)
    pred = jax.random.normal(k1, (2, 4, 16, 16), dtype=jnp.float32) * 2.0
    gt = (jax.random.uniform(k2, (2, 4, 16, 16)) > 0.7).astype(jnp.float32)

    # forward with default reduction='mean', as in FocalLoss()
    loss = focal_loss(pred, gt, alpha=0.25, gamma=2.0, reduction='mean')
    jax.block_until_ready(loss)

    # silent correctness checks against pure-JAX reference
    # (reduce path uses approx reciprocal on the EUP -> loosened rtol)
    ref = focal_loss_ref(pred, gt, alpha=0.25, gamma=2.0, reduction='mean')
    assert jnp.allclose(loss, ref, rtol=2e-3, atol=1e-6), (loss, ref)

    loss_sum = focal_loss(pred, gt, reduction='sum')
    assert jnp.allclose(loss_sum, focal_loss_ref(pred, gt, reduction='sum'),
                        rtol=2e-3, atol=1e-5)

    # gt may arrive in a narrow dtype (bf16/int8/bool); kernel upcasts in VMEM.
    loss_sum_bf16 = focal_loss(pred, gt.astype(jnp.bfloat16), reduction='sum')
    assert jnp.allclose(loss_sum_bf16,
                        focal_loss_ref(pred, gt, reduction='sum'),
                        rtol=2e-3, atol=1e-5)

    loss_none = focal_loss(pred, gt, reduction='none')   # exact reciprocal
    assert loss_none.shape == pred.shape
    assert jnp.allclose(loss_none, focal_loss_ref(pred, gt, reduction='none'),
                        rtol=1e-5, atol=1e-6)

    result = {'loss': loss}  # mirrors the module's return dict
    jax.block_until_ready(result['loss'])
    print("KERNEL_OK")
</pallas_src>

<mosaic_0001>
module attributes {stable_mosaic.version = 11 : i64} {
  func.func @_focal_reduce_kernel(%arg0: i32, %arg1: i32, %arg2: memref<16x128xf32, #tpu.memory_space<vmem>>, %arg3: memref<16x128xf32, #tpu.memory_space<vmem>>, %arg4: memref<8x128xf32, #tpu.memory_space<vmem>>) attributes {dimension_semantics = [#tpu.dimension_semantics<parallel>, #tpu.dimension_semantics<arbitrary>], iteration_bounds = array<i64: 2, 1>, scalar_prefetch = 0 : i64, scratch_operands = 0 : i64, tpu.core_type = #tpu.core_type<tc>, window_params = [{transform_indices = @transform_0, window_bounds = array<i64: 16, 128>}, {transform_indices = @transform_1, window_bounds = array<i64: 16, 128>}, {transform_indices = @transform_2, window_bounds = array<i64: 8, 128>}]} {
    %c1_i32 = arith.constant 1 : i32
    %0 = arith.muli %arg0, %c1_i32 : i32
    %1 = arith.addi %0, %arg1 : i32
    %c0_i32 = arith.constant 0 : i32
    %2 = arith.cmpi eq, %arg1, %c0_i32 : i32
    %3 = arith.extui %2 : i1 to i32
    %c0_i32_0 = arith.constant 0 : i32
    %4 = arith.cmpi ne, %3, %c0_i32_0 : i32
    scf.if %4 {
      %cst = arith.constant 0.000000e+00 : f32
      %8 = vector.broadcast %cst : f32 to vector<8x128xf32>
      %c0 = arith.constant 0 : index
      %c0_3 = arith.constant 0 : index
      %9 = vector.load %arg4[%c0, %c0_3] : memref<8x128xf32, #tpu.memory_space<vmem>>, vector<8x128xf32>
      tpu.vector_store %arg4[%c0, %c0_3], %8 {strides = array<i32>} : memref<8x128xf32, #tpu.memory_space<vmem>>, vector<8x128xf32>,
    } else {
    }
    %c1_i32_1 = arith.constant 1 : i32
    %5 = arith.cmpi slt, %1, %c1_i32_1 : i32
    %6 = arith.extui %5 : i1 to i32
    %c0_i32_2 = arith.constant 0 : i32
    %7 = arith.cmpi ne, %6, %c0_i32_2 : i32
    scf.if %7 {
      %c0 = arith.constant 0 : index
      %c0_3 = arith.constant 0 : index
      %8 = vector.load %arg4[%c0, %c0_3] : memref<8x128xf32, #tpu.memory_space<vmem>>, vector<8x128xf32>
      %cst = arith.constant 0.000000e+00 : f32
      %9 = vector.broadcast %cst : f32 to vector<8x128xf32>
      %c0_4 = arith.constant 0 : index
      %c0_5 = arith.constant 0 : index
      %10 = vector.load %arg2[%c0_4, %c0_5] : memref<16x128xf32, #tpu.memory_space<vmem>>, vector<16x128xf32>
      %c0_6 = arith.constant 0 : index
      %c0_7 = arith.constant 0 : index
      %11 = vector.load %arg3[%c0_6, %c0_7] : memref<16x128xf32, #tpu.memory_space<vmem>>, vector<16x128xf32>
      %12 = math.absf %10 : vector<16x128xf32>
      %cst_8 = arith.constant 0.000000e+00 : f32
      %13 = vector.broadcast %cst_8 : f32 to vector<16x128xf32>
      %14 = arith.subf %13, %12 : vector<16x128xf32>
      %15 = math.exp %14 : vector<16x128xf32>
      %cst_9 = arith.constant 0.000000e+00 : f32
      %16 = vector.broadcast %cst_9 : f32 to vector<16x128xf32>
      %17 = arith.maximumf %10, %16 : vector<16x128xf32>
      %18 = arith.mulf %10, %11 : vector<16x128xf32>
      %19 = arith.subf %17, %18 : vector<16x128xf32>
      %20 = math.log1p %15 : vector<16x128xf32>
      %21 = arith.addf %19, %20 : vector<16x128xf32>
      %cst_10 = arith.constant 1.000000e+00 : f32
      %22 = vector.broadcast %cst_10 : f32 to vector<16x128xf32>
      %23 = arith.addf %22, %15 : vector<16x128xf32>
      %24 = tpu.reciprocal %23 {approx = true} : vector<16x128xf32> -> vector<16x128xf32>
      %cst_11 = arith.constant 0.000000e+00 : f32
      %25 = vector.broadcast %cst_11 : f32 to vector<16x128xf32>
      %26 = arith.cmpf oge, %10, %25 : vector<16x128xf32>
      %27 = arith.mulf %15, %24 : vector<16x128xf32>
      %28 = arith.select %26, %24, %27 : vector<16x128xi1>, vector<16x128xf32>
      %29 = arith.addf %28, %11 : vector<16x128xf32>
      %30 = arith.mulf %28, %11 : vector<16x128xf32>
      %cst_12 = arith.constant 2.000000e+00 : f32
      %31 = vector.broadcast %cst_12 : f32 to vector<16x128xf32>
      %32 = arith.mulf %31, %30 : vector<16x128xf32>
      %33 = arith.subf %29, %32 : vector<16x128xf32>
      %34 = arith.mulf %33, %33 : vector<16x128xf32>
      %35 = arith.mulf %21, %34 : vector<16x128xf32>
      %cst_13 = arith.constant -5.000000e-01 : f32
      %36 = vector.broadcast %cst_13 : f32 to vector<16x128xf32>
      %37 = arith.mulf %36, %11 : vector<16x128xf32>
      %cst_14 = arith.constant 7.500000e-01 : f32
      %38 = vector.broadcast %cst_14 : f32 to vector<16x128xf32>
      %39 = arith.addf %37, %38 : vector<16x128xf32>
      %40 = arith.mulf %39, %35 : vector<16x128xf32>
      %41 = vector.shape_cast %40 : vector<16x128xf32> to vector<2x8x128xf32>
      %cst_15 = arith.constant dense<0.000000e+00> : vector<8x128xf32>
      %42 = vector.multi_reduction <add>, %41, %cst_15 [0] : vector<2x8x128xf32> to vector<8x128xf32>
      %43 = arith.addf %9, %42 : vector<8x128xf32>
      %44 = arith.addf %8, %43 : vector<8x128xf32>
      %c0_16 = arith.constant 0 : index
      %c0_17 = arith.constant 0 : index
      %45 = vector.load %arg4[%c0_16, %c0_17] : memref<8x128xf32, #tpu.memory_space<vmem>>, vector<8x128xf32>
      tpu.vector_store %arg4[%c0_16, %c0_17], %44 {strides = array<i32>} : memref<8x128xf32, #tpu.memory_space<vmem>>, vector<8x128xf32>,
    } else {
    }
    return
  }
  func.func @transform_0(%arg0: i32, %arg1: i32) -> (i32, i32) {
    %c1_i32 = arith.constant 1 : i32
    %0 = arith.muli %arg0, %c1_i32 : i32
    %1 = arith.addi %0, %arg1 : i32
    %c0_i32 = arith.constant 0 : i32
    %2 = arith.minsi %1, %c0_i32 : i32
    %c0_i32_0 = arith.constant 0 : i32
    %c0_i32_1 = arith.constant 0 : i32
    return %2, %c0_i32_0 : i32, i32
  }
  func.func @transform_1(%arg0: i32, %arg1: i32) -> (i32, i32) {
    %c1_i32 = arith.constant 1 : i32
    %0 = arith.muli %arg0, %c1_i32 : i32
    %1 = arith.addi %0, %arg1 : i32
    %c0_i32 = arith.constant 0 : i32
    %2 = arith.minsi %1, %c0_i32 : i32
    %c0_i32_0 = arith.constant 0 : i32
    %c0_i32_1 = arith.constant 0 : i32
    return %2, %c0_i32_0 : i32, i32
  }
  func.func @transform_2(%arg0: i32, %arg1: i32) -> (i32, i32) {
    %c0_i32 = arith.constant 0 : i32
    %c0_i32_0 = arith.constant 0 : i32
    return %arg0, %c0_i32 : i32, i32
  }
}

</mosaic_0001>

<bundles_post_ra>
// kernel: tpu_custom_call.1
= control target key start
LH: loop header
LB: loop body
LE: loop exit
PB: predicated region body
PF: predicated region fallthrough
CT: control target
= control target key end

     0   :  { %7 = vsyncpa [#allocation3], 0  ;;  %s977_s0 = inlined_call_operand.hbm [shape: f32[16,128], index: 0, kind: input, shape index: {}]   ;;  %s978_s1 = inlined_call_operand.hbm [shape: f32[16,128], index: 1, kind: input, shape index: {}]   ;;  %s979_s2 = inlined_call_operand.hbm [shape: f32[16,128], index: 2, kind: output, shape index: {}]  }
   0x1   :  { %9 = vsyncpa [#allocation3 + $0x1], 0 }
   0x2   :  { %10 = vsyncpa [#allocation6], 0 }
   0x3   :  { %12 = vsyncpa [#allocation6 + $0x1], 0 }
   0x4   :  { %13 = vsyncpa [#allocation4], 0 }
   0x5   :  { %15 = vsyncpa [#allocation4 + $0x1], 0  ;;  %s753_s9 = smov 0   ;;  %s755_s10 = smov 0  }
   0x6   :  { %s757_s11 = smov 0   ;;  %s759_s12 = smov 0  }
   0x7   :  { %s761_s13 = smov 0   ;;  %s763_s14 = smov 0  }
   0x8   :  { %s765_s15 = smov 0   ;;  %s767_s16 = smov 0  }
   0x9 LB: > { %s436_s17 = sadd.s32 4294967295, %s730_s16   ;;  %s437_s18 = sadd.s32 4294967294, %s730_s16   ;;  %s730_s16 = sphi %s767_s16, %s21_s16   ;;  %s726_s15 = sphi %s765_s15, %s1002_s15   ;;  %s722_s14 = sphi %s763_s14, %s1001_s14   ;;  %s718_s13 = sphi %s761_s13, %s967_s13   ;;  %s714_s12 = sphi %s759_s12, %s1000_s12   ;;  %s710_s11 = sphi %s757_s11, %s999_s11   ;;  %s706_s10 = sphi %s755_s10, %s998_s10   ;;  %s702_s9 = sphi %s753_s9, %s997_s9  }
   0xa   : > { %s33_s19 = sadd.s32 1, %s726_s15  ;;  %p699_p1 = scmp.ne.s32.totalorder %s718_s13, 0 }
   0xb   : > { %p35_p0 = scmp.ge.s32.totalorder %s33_s19, 2  ;;  %p54_p2 = scmp.eq.s32.totalorder %s730_s16, 0 }
   0xc   : > { %p59_p3 = scmp.ne.s32.totalorder %s718_s13, %s714_s12  ;;  %p60_p5 = scmp.eq.s32.totalorder %s436_s17, 0 }
   0xd   : > { %s1004_s19 = smov (%p35_p0, %s33_s19), 0  ;;  %p799_p4 = por %p699_p1, %p54_p2 }
   0xe   : > { %p803_p6 = por %p60_p5, %p59_p3  ;;  %s101_s22 = ssub.s32 %s726_s15, %s1004_s19 }
   0xf   : > { %p102_p7 = scmp.eq.s32.totalorder %s101_s22, 0  ;;  %s104_s23 = sadd.s32 1, %s710_s11 }
  0x10   : > { %s983_s21 = scalar_select %p803_p6, 1, 0 }
  0x11   : > { %s811_s24 = scalar_select %p102_p7, %s710_s11, %s104_s23  }
  0x12   : > { %p114_p8 = scmp.ne.s32.totalorder %s710_s11, %s706_s10  ;;  %p115_p9 = scmp.eq.s32.totalorder %s436_s17, 1 }
  0x13   : > { %p120_p10 = scmp.ne.s32.totalorder %s706_s10, %s702_s9  ;;  %p121_p11 = scmp.eq.s32.totalorder %s437_s18, 1 }
  0x14   : > { %p817_p12 = por %p115_p9, %p114_p8  ;;  %p474_p1 = scmp.lt.s32.totalorder %s730_s16, 2 }
  0x15   : > { %p822_p0 = por %p121_p11, %p120_p10  ;;  %s732_s27 = smov [#allocation2]  }
  0x16   : > { %s984_s25 = scalar_select %p817_p12, 1, 0 }
  0x17   : > { %s985_s26 = scalar_select %p822_p0, 1, 0 }
  0x18   : > { %s155_s28 = sshll.u32 %s732_s27, 4  ;;  %p829_p2 = pnand %p474_p1, %p799_p4  ;;  %s156_s28 = int_to_ptr.vmem [resolvable:$true] %s155_s28 }
  0x19   : > { %s563_s4 = scalar_lea.hbm %s977_s0, 256 }
  0x1a   : > { %p564_p3 = scmp.ne.s32.totalorder %s977_s0, %s563_s4  ;;  %p565_p5 = pneg %p829_p2 }
  0x1b   : > { %p570_p8 = scmp.lt.u32.totalorder %s563_s4, %s563_s4  ;;  %p572_p9 = scmp.lt.u32.totalorder %s563_s4, %s977_s0 }
  0x1c   : > { %p566_p7 = pnand %p565_p5, %p564_p3 }
  0x1d   : > { %p573_p10 = por %p572_p9, %p570_p8 }
  0x1e   : > { %p567_p4 = pneg %p566_p7 }
  0x20   : > { %p574_p11 = pnand %p573_p10, %p567_p4 }
  0x22   : > { %577 = shalt.err (!%p574_p11)
}
  0x23   : > { %s578_s12 = scalar_lea.vmem %s156_s28, 256  ;;  %s585_s17 = scalar_lea.vmem %s156_s28, 512 }
  0x24   : > { %p579_p1 = scmp.ne.s32.totalorder %s156_s28, %s578_s12  ;;  %p586_p12 = scmp.lt.s32.totalorder %s156_s28, %s156_s28 }
  0x25   : > { %p587_p6 = scmp.lt.s32.totalorder %s585_s17, %s578_s12 }
  0x26   : > { %p581_p13 = pnand %p579_p1, %p565_p5 }
  0x27   : > { %p588_p3 = por %p587_p6, %p586_p12 }
  0x28   : > { %p582_p0 = pneg %p581_p13 }
  0x2a   : > { %p589_p7 = pnand %p588_p3, %p582_p0 }
  0x2c   : > { %592 = shalt.err (!%p589_p7)
}
  0x2d   : > { %s733_s18 = smov 128   ;;  %s734_s20 = smov 8  }
  0x2e   : > { %466 = dma.hbm_to_vmem [thread:$0]  (!%p829_p2), %s977_s0, 256, %s156_s28, [#allocation3], %s733_s18, %s733_s18, %s734_s20  }
  0x2f   : > { %p446_p13 = scmp.ge.s32.totalorder %s730_s16, 1  ;;  %p187_p4 = scmp.lt.s32.totalorder %s730_s16, 3 }
  0x30   : > { %s735_s30 = smov [#allocation5]   ;;  %s593_s6 = scalar_lea.hbm %s978_s1, 256 }
  0x31   : > { %p860_p8 = pnand %p446_p13, %p187_p4  ;;  %s179_s3 = sshll.u32 %s735_s30, 4  ;;  %s180_s3 = int_to_ptr.vmem [resolvable:$true] %s179_s3 }
  0x32   : > { %p594_p6 = scmp.ne.s32.totalorder %s978_s1, %s593_s6  ;;  %p600_p9 = scmp.lt.u32.totalorder %s593_s6, %s593_s6 }
  0x33   : > { %s987_s27 = scalar_select %p860_p8, 1, 0 }
  0x34   : > { %p596_p12 = pnand %p594_p6, %p565_p5  ;;  %p602_p10 = scmp.lt.u32.totalorder %s593_s6, %s978_s1 }
  0x36   : > { %p597_p0 = pneg %p596_p12  ;;  %p603_p11 = por %p602_p10, %p600_p9 }
  0x38   : > { %p604_p1 = pnand %p603_p11, %p597_p0 }
  0x3a   : > { %607 = shalt.err (!%p604_p1)
}
  0x3b   : > { %s608_s17 = scalar_lea.vmem %s180_s3, 256  ;;  %s615_s22 = scalar_lea.vmem %s180_s3, 512 }
  0x3c   : > { %p609_p3 = scmp.ne.s32.totalorder %s180_s3, %s608_s17  ;;  %p616_p4 = scmp.lt.s32.totalorder %s180_s3, %s180_s3 }
  0x3d   : > { %p617_p8 = scmp.lt.s32.totalorder %s615_s22, %s608_s17 }
  0x3e   : > { %p611_p7 = pnand %p609_p3, %p565_p5 }
  0x3f   : > { %p618_p6 = por %p617_p8, %p616_p4 }
  0x40   : > { %p612_p13 = pneg %p611_p7 }
  0x42   : > { %p619_p12 = pnand %p618_p6, %p612_p13 }
  0x44   : > { %622 = shalt.err (!%p619_p12)
}
  0x45   : > { %469 = dma.hbm_to_vmem [thread:$0]  (!%p829_p2), %s978_s1, 256, %s180_s3, [#allocation6], %s733_s18, %s733_s18, %s734_s20  }
  0x46   : > { %p988_p0 = scmp.ne.s32.totalorder %s987_s27, 0 }
  0x47   : > { %s193_s4 = sand.u32 (!%p988_p0), 1, %s718_s13   ;;  %p989_p5 = scmp.ne.s32.totalorder (!%p988_p0), %s983_s21, 0 }
  0x48   : > { %191 = sbr.rel (%p988_p0) target bundleno = 162 (0xa2), region = 28  ;;  %s447_s5 = sshll.u32 (!%p988_p0), %s193_s4, 4 }
  0x49   : > { %s194_s6 = scalar_lea.sflag (!%p988_p0), [#allocation3], %s193_s4  ;;  %s197_s7 = scalar_lea.vmem (!%p988_p0), [#allocation2], %s447_s5 }
  0x4f   : > { %688 = dma.done.wait (%p989_p5), %s194_s6, 256  }
  0x50   : > { %690 = vsyncadd (%p989_p5), %s194_s6, 4294967040  ;;  %s203_s29 = scalar_lea.sflag [#allocation6], %s193_s4  ;;  %s894_s8 = scalar_lea.vmem [#allocation5], %s447_s5 }
  0x51   : > { %692 = dma.done.wait (%p989_p5), %s203_s29, 256  }
  0x52   : > { %694 = vsyncadd (%p989_p5), %s203_s29, 4294967040  ;;  %s229_s18 = sand.u32 1, %s706_s10   ;;  %v736_v0 = vmov 0.0   ;;  %p450_p2 = scmp.ge.s32.totalorder %s722_s14, 1 }
  0x53   : > { %s449_s20 = sshll.u32 %s229_s18, 3  ;;  %v251_v1 = vld [vmem:[%s197_s7] sm:$0xff] (!%p450_p2)  ;;  %v252_v2 = vld [vmem:[%s197_s7 + $0x8] sm:$0xff] (!%p450_p2) }
  0x54   : > { %s903_s27 = scalar_lea.vmem [#allocation7], %s449_s20  ;;  %249 = sbr.rel (%p450_p2) target bundleno = 137 (0x89), region = 44  ;;  %v255_v3 = vand.u32 (!%p450_p2), 2147483647, %v251_v1  ;;  %v256_v4 = vand.u32 (!%p450_p2), 2147483647, %v252_v2 }
  0x55   : > { %245 = vst [vmem:[%s903_s27] sm:$0xff] %v736_v0  ;;  %v253_v20 = vld [vmem:[%s894_s8] sm:$0xff] (!%p450_p2)  ;;  %v254_v21 = vld [vmem:[%s894_s8 + $0x8] sm:$0xff] (!%p450_p2)  ;;  %v263_v22 = vmax.f32 (!%p450_p2), %v251_v1, 0.0  ;;  %v264_v25 = vmax.f32 (!%p450_p2), %v252_v2, 0.0  ;;  %vm293_vm0 = vcmp.ge.f32.partialorder (!%p450_p2), %v251_v1, 0.0  ;;  %vm294_vm1 = vcmp.ge.f32.partialorder (!%p450_p2), %v252_v2, 0.0 }
  0x56   : > { %v257_v5 = vsub.f32 (!%p450_p2), 0.0, %v255_v3  ;;  %v258_v6 = vsub.f32 (!%p450_p2), 0.0, %v256_v4  ;;  %v265_v26 = vmul.f32 (!%p450_p2), %v253_v20, %v251_v1  ;;  %v266_v27 = vmul.f32 (!%p450_p2), %v254_v21, %v252_v2 }
  0x57   : > { %v311_v48 = vmul.f32 (!%p450_p2), -0.5, %v253_v20  ;;  %v312_v50 = vmul.f32 (!%p450_p2), -0.5, %v254_v21 }
  0x58   : > { %v259_v7 = vmul.f32 (!%p450_p2), 1.442695, %v257_v5  ;;  %v261_v8 = vmul.f32 (!%p450_p2), 1.442695, %v258_v6  ;;  %v267_v38 = vsub.f32 (!%p450_p2), %v263_v22, %v265_v26  ;;  %v268_v42 = vsub.f32 (!%p450_p2), %v264_v25, %v266_v27 }
  0x59   : > { %v313_v56 = vadd.f32 (!%p450_p2), 0.75, %v311_v48  ;;  %v314_v58 = vadd.f32 (!%p450_p2), 0.75, %v312_v50 }
  0x5a   : > { %551 = vpow2.f32 (!%p450_p2), %v259_v7 }
  0x5b   : > { %553 = vpow2.f32 %v261_v8 }
  0x5c   : > { %v250_v63 = vld [vmem:[%s903_s27] sm:$0xff] }
  0x64   : > { %v552_v9 = vpop.eup %551 }
  0x65   : > { %v554_v10 = vpop.eup %553  ;;  %v269_v11 = vadd.f32 1.0, %v552_v9  ;;  %v272_v13 = vmul.f32 -0.5, %v552_v9  ;;  %v275_v17 = vand.u32 2147483647, %v552_v9 }
  0x66   : > { %v278_v12 = vadd.f32 1.0, %v554_v10  ;;  %v281_v14 = vmul.f32 -0.5, %v554_v10  ;;  %v284_v23 = vand.u32 2147483647, %v554_v10 }
  0x67   : > { %555 = vlog2.f32 %v269_v11  ;;  %v273_v15 = vadd.f32 1.0, %v272_v13  ;;  %vm909_vm2 = vcmp.lt.f32.partialorder %v275_v17, 0.0004427343 }
  0x68   : > { %557 = vlog2.f32 %v278_v12  ;;  %v282_v18 = vadd.f32 1.0, %v281_v14  ;;  %vm913_vm3 = vcmp.lt.f32.partialorder %v284_v23, 0.0004427343 }
  0x69   : > { %559 = vrcp.f32 %v269_v11  ;;  %v274_v30 = vmul.f32 %v552_v9, %v273_v15 }
  0x6a   : > { %561 = vrcp.f32 %v278_v12  ;;  %v283_v34 = vmul.f32 %v554_v10, %v282_v18 }
  0x71   : > { %v556_v16 = vpop.eup %555 }
  0x72   : > { %v558_v19 = vpop.eup %557  ;;  %v271_v29 = vmul.f32 0.6931472, %v556_v16 }
  0x73   : > { %v560_v24 = vpop.eup %559  ;;  %v280_v33 = vmul.f32 0.6931472, %v558_v19 }
  0x74   : > { %v562_v28 = vpop.eup %561  ;;  %v295_v31 = vmul.f32 %v560_v24, %v552_v9  ;;  %v277_v43 = vsel %vm909_vm2, %v274_v30, %v271_v29 }
  0x75   : > { %v296_v35 = vmul.f32 %v562_v28, %v554_v10  ;;  %v286_v46 = vsel %vm913_vm3, %v283_v34, %v280_v33  ;;  %v287_v51 = vadd.f32 %v277_v43, %v267_v38 }
  0x76   : > { %v297_v37 = vsel %vm293_vm0, %v560_v24, %v295_v31  ;;  %v288_v53 = vadd.f32 %v286_v46, %v268_v42 }
  0x77   : > { %v298_v39 = vsel %vm294_vm1, %v562_v28, %v296_v35  ;;  %v299_v40 = vadd.f32 %v297_v37, %v253_v20  ;;  %v301_v41 = vmul.f32 %v297_v37, %v253_v20 }
  0x78   : > { %v300_v44 = vadd.f32 %v298_v39, %v254_v21  ;;  %v302_v45 = vmul.f32 %v298_v39, %v254_v21 }
  0x79   : > { %v303_v47 = vmul.f32 2.0, %v301_v41 }
  0x7a   : > { %v304_v49 = vmul.f32 2.0, %v302_v45 }
  0x7b   : > { %v305_v52 = vsub.f32 %v299_v40, %v303_v47 }
  0x7c   : > { %v306_v54 = vsub.f32 %v300_v44, %v304_v49 }
  0x7d   : > { %v307_v55 = vmul.f32 %v305_v52, %v305_v52 }
  0x7e   : > { %v308_v57 = vmul.f32 %v306_v54, %v306_v54 }
  0x7f   : > { %v309_v59 = vmul.f32 %v307_v55, %v287_v51 }
  0x80   : > { %v310_v60 = vmul.f32 %v308_v57, %v288_v53 }
  0x81   : > { %v315_v61 = vmul.f32 %v313_v56, %v309_v59 }
  0x82   : > { %v316_v62 = vmul.f32 %v314_v58, %v310_v60 }
  0x84   : > { %v317_v0 = vadd.f32 %v316_v62, %v315_v61 }
  0x86   : > { %v319_v1 = vadd.f32 %v317_v0, %v250_v63 }
  0x88   : > { %320 = vst [vmem:[%s903_s27] sm:$0xff] %v319_v1 }
  0x89 PF: > { %s452_s21 = sshll.u32 %s722_s14, 7  ;;  %s335_s17 = sshll.u32 %s903_s27, 4  ;;  %s336_s17 = int_to_ptr.vmem [resolvable:$true] %s335_s17 }
  0x8a   : > { %s927_s12 = scalar_lea.hbm %s979_s2, %s452_s21  ;;  %s322_s22 = scalar_lea.sflag [#allocation4], %s229_s18 }
  0x8b   : > { %s623_s23 = scalar_lea.vmem %s336_s17, 128  ;;  %p994_p9 = scmp.ne.s32.totalorder %s984_s25, 0 }
  0x8c   : > { %p624_p8 = scmp.ne.s32.totalorder %s336_s17, %s623_s23  ;;  %s737_s30 = smov [#allocation7]  }
  0x8d   : > { %s627_s4 = sshll.u32 %s737_s30, 4  ;;  %s628_s4 = int_to_ptr.vmem [resolvable:$false] %s627_s4 }
  0x8e   : > { %p625_p10 = pnand %p624_p8, %p994_p9  ;;  %s629_s5 = scalar_lea.vmem %s628_s4, 256 }
  0x8f   : > { %p630_p1 = scmp.lt.s32.totalorder %s336_s17, %s628_s4  ;;  %p631_p3 = scmp.lt.s32.totalorder %s629_s5, %s623_s23 }
  0x90   : > { %p626_p11 = pneg %p625_p10 }
  0x91   : > { %p632_p7 = por %p631_p3, %p630_p1 }
  0x93   : > { %p633_p13 = pnand %p632_p7, %p626_p11 }
  0x95   : > { %636 = shalt.err (!%p633_p13)
}
  0x96   : > { %s637_s14 = scalar_lea.hbm %s927_s12, 128  ;;  %s641_s29 = scalar_lea.hbm %s979_s2, 256 }
  0x97   : > { %p638_p4 = scmp.ne.s32.totalorder %s927_s12, %s637_s14  ;;  %p642_p0 = scmp.lt.u32.totalorder %s927_s12, %s979_s2 }
  0x98   : > { %p643_p5 = scmp.lt.u32.totalorder %s641_s29, %s637_s14  ;;  %p645_p8 = scmp.lt.u32.totalorder %s637_s14, %s927_s12 }
  0x99   : > { %p639_p6 = pnand %p638_p4, %p994_p9 }
  0x9a   : > { %p644_p2 = por %p643_p5, %p642_p0 }
  0x9b   : > { %p640_p12 = pneg %p639_p6 }
  0x9c   : > { %p646_p10 = por %p645_p8, %p644_p2 }
  0x9e   : > { %p647_p11 = pnand %p646_p10, %p640_p12 }
  0xa0   : > { %650 = shalt.err (!%p647_p11)
}
  0xa1   : > { %461 = dma.vmem_to_hbm [thread:$0]  (%p994_p9), %s336_s17, 128, %s927_s12, %s322_s22  }
  0xa2 PF: > { %s347_s20 = sand.u32 1, %s702_s9   ;;  %p995_p1 = scmp.ne.s32.totalorder %s985_s26, 0 }
  0xa3   : > { %p996_p3 = scmp.ge.s32.totalorder %s730_s16, 2  ;;  %s348_s27 = scalar_lea.sflag [#allocation4], %s347_s20 }
  0xa5   : > { %p471_p7 = pnand %p996_p3, %p995_p1 }
  0xa7   : > { %696 = dma.done.wait (!%p471_p7), %s348_s27, 128  }
  0xa8   : > { %698 = vsyncadd (!%p471_p7), %s348_s27, 4294967168  ;;  %s21_s16 = sadd.s32 1, %s730_s16   ;;  %s997_s9 = smov %s706_s10 }
  0xa9   : > { %p18_p13 = scmp.ge.s32.totalorder %s21_s16, 4   ;;  %s998_s10 = smov %s710_s11 }
  0xaa   : > { %s999_s11 = smov %s811_s24  ;;  %s1000_s12 = smov %s718_s13 }
  0xab   : > { %s967_s13 = smov 0   ;;  %s1001_s14 = smov %s726_s15 }
  0xac   : > { %s1002_s15 = smov %s1004_s19  ;;  %20 = sbr.rel (!%p18_p13) target bundleno = 9 (0x9), region = 94 }
  0xb3   :  { %353 = vsyncpa [#allocation3], 1 }
  0xb4   :  { %355 = vsyncpa [#allocation3 + $0x1], 1 }
  0xb5   :  { %356 = vsyncpa [#allocation6], 1 }
  0xb6   :  { %358 = vsyncpa [#allocation6 + $0x1], 1 }
  0xb7   :  { %359 = vsyncpa [#allocation4], 1 }
  0xb8   :  { %361 = vsyncpa [#allocation4 + $0x1], 1 }

</bundles_post_ra>
